<compile_context>
chip_gen: v7x
topology: tpu7x:2x2x1
jax: 0.10.0
libtpu: 0.0.40
codegen_flags: <defaults>
</compile_context>

<pallas_src>
import jax
import jax.numpy as jnp
from jax.experimental import pallas as pl
from jax.experimental.pallas import tpu as pltpu


def _round_up(v, m):
    return (v + m - 1) // m * m


def _gnn_kernel(x_ref, w1_ref, b1_ref, w2_ref, b2_ref, o_ref):
    # Cast the node-feature tile to the weight compute dtype (bf16) in-kernel:
    # avoids an extra HBM write+read pass over a pre-cast copy of x.
    x = x_ref[...].astype(w1_ref.dtype)
    # Layer 1: MXU matmul (bf16 operands, f32 accumulation) + bias + ReLU.
    h = jnp.dot(x, w1_ref[...], preferred_element_type=jnp.float32)
    h = jnp.maximum(h + b1_ref[...], 0.0)          # b1 broadcasts [1, hid] over rows
    # Layer 2: re-cast activations to bf16 for the full-rate MXU path; f32 accumulate.
    y = jnp.dot(h.astype(w2_ref.dtype), w2_ref[...],
                preferred_element_type=jnp.float32)
    o_ref[...] = (y + b2_ref[...]).astype(o_ref.dtype)


def prepare_gnn_params(w1_t, b1, w2_t, b2, compute_dtype=jnp.bfloat16):
    """One-time parameter prep (cast weights to bf16, make biases 2-D f32).

    w1_t: [in, hidden]   conv1 weight pre-transposed (nn.Linear stores [hidden, in])
    w2_t: [hidden, out]  conv2 weight pre-transposed
    """
    return (w1_t.astype(compute_dtype),
            b1.reshape(1, -1).astype(jnp.float32),
            w2_t.astype(compute_dtype),
            b2.reshape(1, -1).astype(jnp.float32))


def basic_gnn_forward(x, edge_index, w1, b1, w2, b2, *, block_rows=2048):
    """Fused BasicGNN forward: relu(x @ w1 + b1) @ w2 + b2.

    x: [N, in] node features (f32).  w1/b1/w2/b2 come from prepare_gnn_params.
    edge_index is unused — parity with the PyTorch forward (plain Linear layers).
    """
    del edge_index  # unused in the reference forward pass
    n, in_f = x.shape
    hid = w1.shape[1]
    out_f = w2.shape[1]
    out_dtype = x.dtype

    # Row tile: multiple of 8, capped by block_rows, and capped near n/2 so the
    # grid has >= 2 steps when possible (both v7x TensorCores get work).
    tm = min(block_rows, max(8, _round_up(pl.cdiv(n, 2), 8)))
    grid = (pl.cdiv(n, tm),)

    x_isz = jnp.dtype(x.dtype).itemsize
    o_isz = jnp.dtype(out_dtype).itemsize
    w_isz = jnp.dtype(w1.dtype).itemsize

    # Scoped-VMEM budget: double-buffered x/out tiles + resident params (also
    # double-buffered by the pipeline) + f32 intermediates, with generous margin.
    tile_bytes = 2 * tm * in_f * x_isz + 2 * tm * out_f * o_isz
    param_bytes = 2 * (w1.size * w_isz + w2.size * w_isz + (b1.size + b2.size) * 4)
    interm_bytes = tm * (hid + out_f) * 4
    vmem_limit = int(min(64 * 1024 * 1024,
                         max(8 * 1024 * 1024,
                             2 * (tile_bytes + param_bytes + interm_bytes))))

    flops = 2 * n * (in_f * hid + hid * out_f)
    bytes_accessed = (n * in_f * x_isz
                      + w1.size * w_isz + w2.size * w_isz
                      + (b1.size + b2.size) * 4
                      + n * out_f * o_isz)

    return pl.pallas_call(
        _gnn_kernel,
        out_shape=jax.ShapeDtypeStruct((n, out_f), out_dtype),
        grid=grid,
        in_specs=[
            # Row tile of node features: pipelined / double-buffered per step.
            pl.BlockSpec((tm, in_f), lambda i: (i, 0)),
            # Weights & biases: constant index_map -> not re-DMA'd per step.
            pl.BlockSpec((in_f, hid), lambda i: (0, 0)),
            pl.BlockSpec((1, hid), lambda i: (0, 0)),
            pl.BlockSpec((hid, out_f), lambda i: (0, 0)),
            pl.BlockSpec((1, out_f), lambda i: (0, 0)),
        ],
        # Natural-width output block (last dim == full array last dim): HBM
        # writeback is only the real out_f columns; OOB rows of the last ragged
        # tile are write-masked.
        out_specs=pl.BlockSpec((tm, out_f), lambda i: (i, 0)),
        compiler_params=pltpu.CompilerParams(
            dimension_semantics=("parallel",),
            vmem_limit_bytes=vmem_limit),
        cost_estimate=pl.CostEstimate(
            flops=flops, transcendentals=0, bytes_accessed=bytes_accessed),
    )(x, w1, b1, w2, b2)


def _reference(x, w1_t, b1, w2_t, b2, compute_dtype=jnp.float32):
    """Pure-JAX reference; compute_dtype=bf16 mimics the kernel's operand rounding."""
    xc = x.astype(compute_dtype).astype(jnp.float32)
    w1c = w1_t.astype(compute_dtype).astype(jnp.float32)
    w2c = w2_t.astype(compute_dtype).astype(jnp.float32)
    h = jnp.maximum(xc @ w1c + b1.reshape(1, -1), 0.0)
    h = h.astype(compute_dtype).astype(jnp.float32)
    return h @ w2c + b2.reshape(1, -1)


if __name__ == "__main__":
    # Small shapes consistent with the PyTorch module's forward.
    num_nodes = 8
    in_features = 16
    hidden_features = 32
    out_features = 8

    key = jax.random.PRNGKey(0)
    k_x, k_w1, k_b1, k_w2, k_b2, k_e = jax.random.split(key, 6)

    x = jax.random.normal(k_x, (num_nodes, in_features), jnp.float32)
    # nn.Linear parameters, stored pre-transposed for the kernel.
    w1_t = jax.random.normal(k_w1, (in_features, hidden_features), jnp.float32) * 0.1
    b1 = jax.random.normal(k_b1, (hidden_features,), jnp.float32) * 0.1
    w2_t = jax.random.normal(k_w2, (hidden_features, out_features), jnp.float32) * 0.1
    b2 = jax.random.normal(k_b2, (out_features,), jnp.float32) * 0.1

    # edge_index exists only for API parity with the PyTorch module (unused in forward).
    edge_index = jax.random.randint(k_e, (2, 16), 0, num_nodes, dtype=jnp.int32)

    # One-time parameter prep (bf16 weights, 2-D f32 biases).
    w1_p, b1_p, w2_p, b2_p = prepare_gnn_params(w1_t, b1, w2_t, b2)

    out = basic_gnn_forward(x, edge_index, w1_p, b1_p, w2_p, b2_p)
    out = jax.block_until_ready(out)

    assert out.shape == (num_nodes, out_features)

    # Tight check against a reference that applies the same bf16 operand rounding.
    ref_bf16 = _reference(x, w1_t, b1, w2_t, b2, compute_dtype=jnp.bfloat16)
    assert jnp.allclose(out, ref_bf16, atol=1e-2, rtol=1e-2), \
        float(jnp.max(jnp.abs(out - ref_bf16)))

    # Looser sanity check against the pure-f32 PyTorch-equivalent math.
    ref_f32 = _reference(x, w1_t, b1, w2_t, b2, compute_dtype=jnp.float32)
    assert jnp.allclose(out, ref_f32, atol=5e-2, rtol=5e-2), \
        float(jnp.max(jnp.abs(out - ref_f32)))

    print("KERNEL_OK")
</pallas_src>

<mosaic_0001>
module attributes {stable_mosaic.version = 11 : i64} {
  func.func @_gnn_kernel(%arg0: i32, %arg1: memref<8x16xf32, #tpu.memory_space<vmem>>, %arg2: memref<16x32xbf16, #tpu.memory_space<vmem>>, %arg3: memref<1x32xf32, #tpu.memory_space<vmem>>, %arg4: memref<32x8xbf16, #tpu.memory_space<vmem>>, %arg5: memref<1x8xf32, #tpu.memory_space<vmem>>, %arg6: memref<8x8xf32, #tpu.memory_space<vmem>>) attributes {dimension_semantics = [#tpu.dimension_semantics<parallel>], iteration_bounds = array<i64: 1>, scalar_prefetch = 0 : i64, scratch_operands = 0 : i64, tpu.core_type = #tpu.core_type<tc>, window_params = [{transform_indices = @transform_0, window_bounds = array<i64: 8, 16>}, {pipeline_mode = #tpu.pipeline_mode<synchronous>, transform_indices = @transform_1, window_bounds = array<i64: 16, 32>}, {pipeline_mode = #tpu.pipeline_mode<synchronous>, transform_indices = @transform_2, window_bounds = array<i64: 1, 32>}, {pipeline_mode = #tpu.pipeline_mode<synchronous>, transform_indices = @transform_3, window_bounds = array<i64: 32, 8>}, {pipeline_mode = #tpu.pipeline_mode<synchronous>, transform_indices = @transform_4, window_bounds = array<i64: 1, 8>}, {transform_indices = @transform_5, window_bounds = array<i64: 8, 8>}]} {
    %c0 = arith.constant 0 : index
    %c0_0 = arith.constant 0 : index
    %0 = vector.load %arg1[%c0, %c0_0] : memref<8x16xf32, #tpu.memory_space<vmem>>, vector<8x16xf32>
    %1 = arith.truncf %0 : vector<8x16xf32> to vector<8x16xbf16>
    %c0_1 = arith.constant 0 : index
    %c0_2 = arith.constant 0 : index
    %2 = vector.load %arg2[%c0_1, %c0_2] : memref<16x32xbf16, #tpu.memory_space<vmem>>, vector<16x32xbf16>
    %cst = arith.constant dense<0.000000e+00> : vector<8x32xf32>
    %3 = tpu.matmul %1, %2, %cst {dimension_numbers = #tpu.dot_dimension_numbers<[1], [0], [0], [1], [0, 0, 1, 1], [], []>} : vector<8x16xbf16>, vector<16x32xbf16>, vector<8x32xf32> -> vector<8x32xf32>
    %c0_3 = arith.constant 0 : index
    %c0_4 = arith.constant 0 : index
    %4 = vector.load %arg3[%c0_3, %c0_4] : memref<1x32xf32, #tpu.memory_space<vmem>>, vector<1x32xf32>
    %5 = vector.broadcast %4 : vector<1x32xf32> to vector<8x32xf32>
    %6 = arith.addf %3, %5 : vector<8x32xf32>
    %cst_5 = arith.constant 0.000000e+00 : f32
    %7 = vector.broadcast %cst_5 : f32 to vector<8x32xf32>
    %8 = arith.maximumf %6, %7 : vector<8x32xf32>
    %9 = arith.truncf %8 : vector<8x32xf32> to vector<8x32xbf16>
    %c0_6 = arith.constant 0 : index
    %c0_7 = arith.constant 0 : index
    %10 = vector.load %arg4[%c0_6, %c0_7] : memref<32x8xbf16, #tpu.memory_space<vmem>>, vector<32x8xbf16>
    %cst_8 = arith.constant dense<0.000000e+00> : vector<8x8xf32>
    %11 = tpu.matmul %9, %10, %cst_8 {dimension_numbers = #tpu.dot_dimension_numbers<[1], [0], [0], [1], [0, 0, 1, 1], [], []>} : vector<8x32xbf16>, vector<32x8xbf16>, vector<8x8xf32> -> vector<8x8xf32>
    %c0_9 = arith.constant 0 : index
    %c0_10 = arith.constant 0 : index
    %12 = vector.load %arg5[%c0_9, %c0_10] : memref<1x8xf32, #tpu.memory_space<vmem>>, vector<1x8xf32>
    %13 = vector.broadcast %12 : vector<1x8xf32> to vector<8x8xf32>
    %14 = arith.addf %11, %13 : vector<8x8xf32>
    %c0_11 = arith.constant 0 : index
    %c0_12 = arith.constant 0 : index
    %15 = vector.load %arg6[%c0_11, %c0_12] : memref<8x8xf32, #tpu.memory_space<vmem>>, vector<8x8xf32>
    tpu.vector_store %arg6[%c0_11, %c0_12], %14 {strides = array<i32>} : memref<8x8xf32, #tpu.memory_space<vmem>>, vector<8x8xf32>,
    return
  }
  func.func @transform_0(%arg0: i32) -> (i32, i32) {
    %c0_i32 = arith.constant 0 : i32
    %c0_i32_0 = arith.constant 0 : i32
    return %arg0, %c0_i32 : i32, i32
  }
  func.func @transform_1(%arg0: i32) -> (i32, i32) {
    %c0_i32 = arith.constant 0 : i32
    %c0_i32_0 = arith.constant 0 : i32
    %c0_i32_1 = arith.constant 0 : i32
    return %c0_i32, %c0_i32_0 : i32, i32
  }
  func.func @transform_2(%arg0: i32) -> (i32, i32) {
    %c0_i32 = arith.constant 0 : i32
    %c0_i32_0 = arith.constant 0 : i32
    %c0_i32_1 = arith.constant 0 : i32
    return %c0_i32, %c0_i32_0 : i32, i32
  }
  func.func @transform_3(%arg0: i32) -> (i32, i32) {
    %c0_i32 = arith.constant 0 : i32
    %c0_i32_0 = arith.constant 0 : i32
    %c0_i32_1 = arith.constant 0 : i32
    return %c0_i32, %c0_i32_0 : i32, i32
  }
  func.func @transform_4(%arg0: i32) -> (i32, i32) {
    %c0_i32 = arith.constant 0 : i32
    %c0_i32_0 = arith.constant 0 : i32
    %c0_i32_1 = arith.constant 0 : i32
    return %c0_i32, %c0_i32_0 : i32, i32
  }
  func.func @transform_5(%arg0: i32) -> (i32, i32) {
    %c0_i32 = arith.constant 0 : i32
    %c0_i32_0 = arith.constant 0 : i32
    return %arg0, %c0_i32 : i32, i32
  }
}

</mosaic_0001>

<bundles_post_ra>
// kernel: tpu_custom_call.1
= control target key start
LH: loop header
LB: loop body
LE: loop exit
PB: predicated region body
PF: predicated region fallthrough
CT: control target
= control target key end

     0   :  { %v224_v1 = vmov 0.0   ;;  %vm39_vm0 = vcmask 130048   ;;  %vm225_vm1 = vmmov 0   ;;  %s287_s0 = inlined_call_operand.vmem [shape: f32[8,16], index: 0, kind: input, shape index: {}]   ;;  %s288_s1 = inlined_call_operand.vmem [shape: bf16[16,32], index: 1, kind: input, shape index: {}]   ;;  %s289_s2 = inlined_call_operand.vmem [shape: f32[1,32], index: 2, kind: input, shape index: {}]   ;;  %s290_s3 = inlined_call_operand.vmem [shape: bf16[32,8], index: 3, kind: input, shape index: {}]   ;;  %s291_s4 = inlined_call_operand.vmem [shape: f32[1,8], index: 4, kind: input, shape index: {}]   ;;  %s292_s5 = inlined_call_operand.hbm [shape: f32[8,8], index: 5, kind: output, shape index: {}]  }
   0x1   :  { %v197_v0 = vld [vmem:[%s288_s1] sm:$0xff]   ;;  %180 = vmatprep.subr.bf16.mxu0 %v224_v1  ;;  %186 = vmatprep.subr.bf16.mxu1 %v224_v1 }
   0x2   :  { %v22_v2 = vld [vmem:[%s287_s0] sm:$0xff]  ;;  %181 = vmatpush3.bf16.msra.mxu0 %v197_v0  ;;  %182 = vmatprep.mubr.msk.bf16.mxu0 %vm225_vm1, %v224_v1 }
   0x3   :  { %v23_v3 = vpack.c.bf16 %v22_v2, %v22_v2  ;;  %190 = vmatprep.mubr.msk.bf16.mxu1 %vm225_vm1, %v224_v1 }
   0x4   :  { %10 = vsyncpa [#allocation3], 0  ;;  %v198_v4 = vld [vmem:[%s290_s3] sm:$0xff]   ;;  %v199_v5 = vld [vmem:[%s290_s3 + $0x8] sm:$0xff]   ;;  %vm108_vm2 = vcmask 261120   ;;  %s226_s28 = smov [#allocation2]  }
   0x5   :  { %183 = vmatmul.mubr.msk.bf16.vlgmr.msra.gmra.mrb[0].mxu0 %vm39_vm0, %v23_v3  ;;  %187 = vmatpush3.bf16.msra.mxu1 %v198_v4  ;;  %v168_v6 = vld [vmem:[%s289_s2] ss:$0 sm:$0xff]  ;;  %s160_s3 = sshll.u32 %s226_s28, 4  ;;  %vm152_vm3 = vcmask 64512   ;;  %s161_s3 = int_to_ptr.vmem [resolvable:$true] %s160_s3 }
   0x6   :  { %188 = vmatprep.subr.bf16.mxu1 %v224_v1  ;;  %v171_v14 = vld [vmem:[%s291_s4] ss:$0 sm:$0xff]  ;;  %s200_s2 = scalar_lea.vmem %s161_s3, 128  ;;  %p205_p1 = scmp.lt.s32.totalorder %s161_s3, %s161_s3 }
   0x7   :  { %p201_p0 = scmp.ne.s32.totalorder %s161_s3, %s200_s2  ;;  %p206_p2 = scmp.lt.s32.totalorder %s200_s2, %s200_s2 }
   0x9   :  { %189 = vmatpush3.bf16.msra.mxu1 %v199_v5  ;;  %p207_p3 = por %p206_p2, %p205_p1 }
   0xb   :  { %p208_p4 = pnand %p207_p3, %p201_p0 }
  0xd8   :  { %v77_v7 = vpop.f32.mrb[0].mxu0 }
  0xd9   :  { %v78_v8 = vadd.f32 %v168_v6, %v77_v7  ;;  %v184_v9 = vpop.f32.mrb[1].mxu0 }
  0xda   :  { %v80_v10 = vpop.f32.mrb[2].mxu0 }
  0xdb   :  { %v83_v11 = vmax.f32 %v78_v8, 0.0  ;;  %v185_v12 = vpop.f32.mrb[3].mxu0 }
  0xdd   :  { %v84_v13 = vpack.c.bf16 %v83_v11, %v83_v11 }
  0xdf   :  { %191 = vmatmul.mubr.msk.bf16.vlgmr.msra.gmra.mrb[0].mxu1 %vm108_vm2, %v84_v13 }
 0x1b2   :  { %v146_v15 = vpop.f32.mrb[0].mxu1 }
 0x1b3   :  { %v147_v16 = vadd.f32 %v171_v14, %v146_v15  ;;  %v192_v17 = vpop.f32.mrb[1].mxu1 }
 0x1b4   :  { %v149_v18 = vpop.f32.mrb[2].mxu1 }
 0x1b5   :  { %v193_v19 = vpop.f32.mrb[3].mxu1  ;;  %153 = vst.msk [vmem:[#allocation2] sm:$0xff] %vm152_vm3, %v147_v16 }
 0x1b6   :  { %211 = shalt.err (!%p208_p4)
}
 0x1b7   :  { %s212_s4 = scalar_lea.hbm %s292_s5, 128 }
 0x1b8   :  { %p213_p5 = scmp.ne.s32.totalorder %s292_s5, %s212_s4  ;;  %p216_p6 = scmp.lt.u32.totalorder %s212_s4, %s292_s5 }
 0x1ba   :  { %p218_p7 = pnand %p216_p6, %p213_p5 }
 0x1bc   :  { %221 = shalt.err (!%p218_p7)
}
 0x1bd   :  { %163 = dma.vmem_to_hbm [thread:$0]  %s161_s3, 128, %s292_s5, [#allocation3]  }
 0x1be   :  { %222 = dma.done.wait [#allocation3], 128  }
 0x1bf   :  { %223 = vsyncadd [#allocation3], 4294967168 }
 0x1c0   :  { %167 = vsyncpa [#allocation3], 1 }

</bundles_post_ra>
